<compile_context>
chip_gen: v5e
topology: v5e:2x2
jax: 0.10.0
libtpu: 0.0.40
codegen_flags: <defaults>
</compile_context>

<pallas_src>
import math

import numpy as np
import jax
import jax.numpy as jnp
from jax import lax
from jax.experimental import pallas as pl
from jax.experimental.pallas import tpu as pltpu

HIDDEN = 9
NUM_HEADS = 3
HEAD_SIZE = 2
ALL_HEAD = NUM_HEADS * HEAD_SIZE        # 6
QKV = 3 * ALL_HEAD                      # 18


def _bert_self_attention_kernel(x_ref, w_ref, b_ref, m_ref, o_ref):
    # x_ref: (1, S, HIDDEN)   w_ref: (HIDDEN, QKV)   b_ref: (1, QKV)
    # m_ref: (NUM_HEADS, 1, ALL_HEAD) 0/1 head-column mask
    # o_ref: (1, S, ALL_HEAD)
    seq = x_ref.shape[1]

    x = x_ref[0]                                         # (S, HIDDEN)
    # Fused Q/K/V projection: one MXU op (attention scale pre-folded into the
    # q columns of w/b on the host).
    qkv = jnp.dot(x, w_ref[...], preferred_element_type=jnp.float32) + b_ref[...]
    q = qkv[:, 0:ALL_HEAD]
    k = qkv[:, ALL_HEAD:2 * ALL_HEAD]
    v = qkv[:, 2 * ALL_HEAD:3 * ALL_HEAD]

    hm = m_ref[...]                                      # (NUM_HEADS, 1, ALL_HEAD)

    # Stack heads on the sublane axis: one matmul produces every head's score
    # matrix, and one softmax chain normalizes all of them.
    q_st = (q[None, :, :] * hm).reshape(NUM_HEADS * seq, ALL_HEAD)
    scores = lax.dot_general(q_st, k, (((1,), (1,)), ((), ())),
                             preferred_element_type=jnp.float32)   # (3S, S)

    m_max = jnp.max(scores, axis=-1, keepdims=True)
    e = jnp.exp(scores - m_max)
    denom = jnp.sum(e, axis=-1, keepdims=True)
    probs = e * pl.reciprocal(denom, approx=True)        # EUP vrcp
    # dropout(p=0.0) is the identity.

    # Per-head context: masked V puts each head's result in its own output
    # columns, so summing over heads is the concat back to (S, ALL_HEAD).
    probs3 = probs.reshape(NUM_HEADS, seq, seq)
    v3 = v[None, :, :] * hm                              # (NUM_HEADS, S, ALL_HEAD)
    ctx3 = jnp.einsum("hqk,hkd->hqd", probs3, v3,
                      preferred_element_type=jnp.float32)
    o_ref[0] = jnp.sum(ctx3, axis=0).astype(o_ref.dtype)


def prepare_params(wq, bq, wk, bk, wv, bv):
    """One-time parameter prep (outside the per-call path): fuse the QKV
    projections, fold in 1/sqrt(head_size), build the 0/1 head-column mask."""
    scale = 1.0 / math.sqrt(HEAD_SIZE)
    w_qkv = jnp.concatenate([wq.T * scale, wk.T, wv.T], axis=1)      # (HIDDEN, 18)
    b_qkv = jnp.concatenate([bq * scale, bk, bv]).reshape(1, QKV)    # (1, 18)
    head_mask = jnp.asarray(
        (np.arange(ALL_HEAD)[None, :] // HEAD_SIZE
         == np.arange(NUM_HEADS)[:, None]).astype(np.float32)
    ).reshape(NUM_HEADS, 1, ALL_HEAD)                                 # (3, 1, 6)
    return w_qkv, b_qkv, head_mask


@jax.jit
def bert_self_attention(x, w_qkv, b_qkv, head_mask):
    """x: (B, S, HIDDEN) f32; pre-fused w_qkv (HIDDEN, 18), b_qkv (1, 18)."""
    B, S, H = x.shape
    assert H == HIDDEN
    return pl.pallas_call(
        _bert_self_attention_kernel,
        out_shape=jax.ShapeDtypeStruct((B, S, ALL_HEAD), jnp.float32),
        grid=(B,),                                       # batch on the grid
        in_specs=[
            pl.BlockSpec((1, S, HIDDEN), lambda b: (b, 0, 0)),
            pl.BlockSpec((HIDDEN, QKV), lambda b: (0, 0)),
            pl.BlockSpec((1, QKV), lambda b: (0, 0)),
            pl.BlockSpec((NUM_HEADS, 1, ALL_HEAD), lambda b: (0, 0, 0)),
        ],
        out_specs=pl.BlockSpec((1, S, ALL_HEAD), lambda b: (b, 0, 0)),
        compiler_params=pltpu.CompilerParams(
            dimension_semantics=("parallel",)),          # shard B across TCs (v7x)
    )(x, w_qkv, b_qkv, head_mask)


def _reference(x, wq, bq, wk, bk, wv, bv):
    B, S, _ = x.shape
    q = x @ wq.T + bq
    k = x @ wk.T + bk
    v = x @ wv.T + bv

    def split(t):  # (B, S, A) -> (B, nh, S, hd)
        return t.reshape(B, S, NUM_HEADS, HEAD_SIZE).transpose(0, 2, 1, 3)

    qh, kh, vh = split(q), split(k), split(v)
    scores = jnp.einsum("bhqd,bhkd->bhqk", qh, kh) / math.sqrt(HEAD_SIZE)
    probs = jax.nn.softmax(scores, axis=-1)
    ctx = jnp.einsum("bhqk,bhkd->bhqd", probs, vh)
    return ctx.transpose(0, 2, 1, 3).reshape(B, S, ALL_HEAD)


if __name__ == "__main__":
    key = jax.random.PRNGKey(0)
    kx, kq, kbq, kk, kbk, kv, kbv = jax.random.split(key, 7)

    B, S = 2, 8
    x = jax.random.normal(kx, (B, S, HIDDEN), dtype=jnp.float32)

    # Deterministic parameter init (mimicking nn.Linear's uniform init scale),
    # torch-style (out_features, in_features) weights.
    bound = 1.0 / math.sqrt(HIDDEN)
    wq = jax.random.uniform(kq, (ALL_HEAD, HIDDEN), jnp.float32, -bound, bound)
    wk = jax.random.uniform(kk, (ALL_HEAD, HIDDEN), jnp.float32, -bound, bound)
    wv = jax.random.uniform(kv, (ALL_HEAD, HIDDEN), jnp.float32, -bound, bound)
    bq = jax.random.uniform(kbq, (ALL_HEAD,), jnp.float32, -bound, bound)
    bk = jax.random.uniform(kbk, (ALL_HEAD,), jnp.float32, -bound, bound)
    bv = jax.random.uniform(kbv, (ALL_HEAD,), jnp.float32, -bound, bound)

    # Parameter fusion happens once, outside the per-call path.
    w_qkv, b_qkv, head_mask = prepare_params(wq, bq, wk, bk, wv, bv)

    out = bert_self_attention(x, w_qkv, b_qkv, head_mask)
    out = jax.block_until_ready(out)

    ref = _reference(x, wq, bq, wk, bk, wv, bv)
    assert out.shape == (B, S, ALL_HEAD)
    # approx-reciprocal (EUP vrcp) softmax normalization -> slightly looser tol.
    assert jnp.allclose(out, ref, atol=2e-3, rtol=2e-3), "mismatch vs reference"

    print("KERNEL_OK")
</pallas_src>

<mosaic_0001>
module attributes {stable_mosaic.version = 11 : i64} {
  func.func @_bert_self_attention_kernel(%arg0: i32, %arg1: memref<1x8x9xf32, #tpu.memory_space<vmem>>, %arg2: memref<9x18xf32, #tpu.memory_space<vmem>>, %arg3: memref<1x18xf32, #tpu.memory_space<vmem>>, %arg4: memref<3x1x6xf32, #tpu.memory_space<vmem>>, %arg5: memref<1x8x6xf32, #tpu.memory_space<vmem>>) attributes {dimension_semantics = [#tpu.dimension_semantics<parallel>], iteration_bounds = array<i64: 2>, scalar_prefetch = 0 : i64, scratch_operands = 0 : i64, tpu.core_type = #tpu.core_type<tc>, window_params = [{transform_indices = @transform_0, window_bounds = array<i64: 1, 8, 9>}, {pipeline_mode = #tpu.pipeline_mode<synchronous>, transform_indices = @transform_1, window_bounds = array<i64: 9, 18>}, {pipeline_mode = #tpu.pipeline_mode<synchronous>, transform_indices = @transform_2, window_bounds = array<i64: 1, 18>}, {pipeline_mode = #tpu.pipeline_mode<synchronous>, transform_indices = @transform_3, window_bounds = array<i64: 3, 1, 6>}, {transform_indices = @transform_4, window_bounds = array<i64: 1, 8, 6>}]} {
    %c0 = arith.constant 0 : index
    %c0_0 = arith.constant 0 : index
    %c0_1 = arith.constant 0 : index
    %0 = vector.load %arg1[%c0, %c0_0, %c0_1] : memref<1x8x9xf32, #tpu.memory_space<vmem>>, vector<1x8x9xf32>
    %1 = vector.shape_cast %0 : vector<1x8x9xf32> to vector<8x9xf32>
    %c0_2 = arith.constant 0 : index
    %c0_3 = arith.constant 0 : index
    %2 = vector.load %arg2[%c0_2, %c0_3] : memref<9x18xf32, #tpu.memory_space<vmem>>, vector<9x18xf32>
    %cst = arith.constant dense<0.000000e+00> : vector<8x18xf32>
    %3 = tpu.matmul %1, %2, %cst {dimension_numbers = #tpu.dot_dimension_numbers<[1], [0], [0], [1], [0, 0, 1, 1], [], []>} : vector<8x9xf32>, vector<9x18xf32>, vector<8x18xf32> -> vector<8x18xf32>
    %c0_4 = arith.constant 0 : index
    %c0_5 = arith.constant 0 : index
    %4 = vector.load %arg3[%c0_4, %c0_5] : memref<1x18xf32, #tpu.memory_space<vmem>>, vector<1x18xf32>
    %5 = vector.broadcast %4 : vector<1x18xf32> to vector<8x18xf32>
    %6 = arith.addf %3, %5 : vector<8x18xf32>
    %7 = vector.extract_strided_slice %6 {offsets = [0, 0], sizes = [8, 6], strides = [1, 1]} : vector<8x18xf32> to vector<8x6xf32>
    %8 = vector.extract_strided_slice %6 {offsets = [0, 6], sizes = [8, 6], strides = [1, 1]} : vector<8x18xf32> to vector<8x6xf32>
    %9 = vector.extract_strided_slice %6 {offsets = [0, 12], sizes = [8, 6], strides = [1, 1]} : vector<8x18xf32> to vector<8x6xf32>
    %c0_6 = arith.constant 0 : index
    %c0_7 = arith.constant 0 : index
    %c0_8 = arith.constant 0 : index
    %10 = vector.load %arg4[%c0_6, %c0_7, %c0_8] : memref<3x1x6xf32, #tpu.memory_space<vmem>>, vector<3x1x6xf32>
    %11 = vector.shape_cast %7 : vector<8x6xf32> to vector<1x8x6xf32>
    %12 = vector.broadcast %11 : vector<1x8x6xf32> to vector<3x8x6xf32>
    %13 = vector.broadcast %10 : vector<3x1x6xf32> to vector<3x8x6xf32>
    %14 = arith.mulf %12, %13 : vector<3x8x6xf32>
    %15 = vector.shape_cast %14 : vector<3x8x6xf32> to vector<24x6xf32>
    %cst_9 = arith.constant dense<0.000000e+00> : vector<24x8xf32>
    %16 = tpu.matmul %15, %8, %cst_9 {dimension_numbers = #tpu.dot_dimension_numbers<[1], [1], [0], [0], [0, 0, 1, 0], [], []>} : vector<24x6xf32>, vector<8x6xf32>, vector<24x8xf32> -> vector<24x8xf32>
    %cst_10 = arith.constant dense<0xFF800000> : vector<24xf32>
    %17 = vector.multi_reduction <maximumf>, %16, %cst_10 [1] : vector<24x8xf32> to vector<24xf32>
    %18 = vector.shape_cast %17 : vector<24xf32> to vector<24x1xf32>
    %19 = vector.broadcast %18 : vector<24x1xf32> to vector<24x8xf32>
    %20 = arith.subf %16, %19 : vector<24x8xf32>
    %21 = math.exp %20 : vector<24x8xf32>
    %cst_11 = arith.constant dense<0.000000e+00> : vector<24xf32>
    %22 = vector.multi_reduction <add>, %21, %cst_11 [1] : vector<24x8xf32> to vector<24xf32>
    %23 = vector.shape_cast %22 : vector<24xf32> to vector<24x1xf32>
    %24 = tpu.reciprocal %23 {approx = true} : vector<24x1xf32> -> vector<24x1xf32>
    %25 = vector.broadcast %24 : vector<24x1xf32> to vector<24x8xf32>
    %26 = arith.mulf %21, %25 : vector<24x8xf32>
    %27 = vector.shape_cast %26 : vector<24x8xf32> to vector<3x8x8xf32>
    %28 = vector.shape_cast %9 : vector<8x6xf32> to vector<1x8x6xf32>
    %29 = vector.broadcast %28 : vector<1x8x6xf32> to vector<3x8x6xf32>
    %30 = vector.broadcast %10 : vector<3x1x6xf32> to vector<3x8x6xf32>
    %31 = arith.mulf %29, %30 : vector<3x8x6xf32>
    "tpu.trace_start"() <{level = 10 : i32, message = "hqk,hkd->hqd"}> : () -> ()
    %cst_12 = arith.constant dense<0.000000e+00> : vector<3x8x6xf32>
    %32 = tpu.matmul %27, %31, %cst_12 {dimension_numbers = #tpu.dot_dimension_numbers<[2], [1], [1], [2], [0, 0, 0, 1, 1, 2], [0], [0]>} : vector<3x8x8xf32>, vector<3x8x6xf32>, vector<3x8x6xf32> -> vector<3x8x6xf32>
    "tpu.trace_stop"() : () -> ()
    %cst_13 = arith.constant dense<0.000000e+00> : vector<8x6xf32>
    %33 = vector.multi_reduction <add>, %32, %cst_13 [0] : vector<3x8x6xf32> to vector<8x6xf32>
    %c0_14 = arith.constant 0 : index
    %c0_15 = arith.constant 0 : index
    %c0_16 = arith.constant 0 : index
    %34 = vector.load %arg5[%c0_14, %c0_15, %c0_16] : memref<1x8x6xf32, #tpu.memory_space<vmem>>, vector<1x8x6xf32>
    %35 = vector.shape_cast %34 : vector<1x8x6xf32> to vector<8x6xf32>
    %36 = vector.shape_cast %33 : vector<8x6xf32> to vector<1x8x6xf32>
    tpu.vector_store %arg5[%c0_14, %c0_15, %c0_16], %36 {strides = array<i32>} : memref<1x8x6xf32, #tpu.memory_space<vmem>>, vector<1x8x6xf32>,
    return
  }
  func.func @transform_0(%arg0: i32) -> (i32, i32, i32) {
    %c0_i32 = arith.constant 0 : i32
    %c0_i32_0 = arith.constant 0 : i32
    %c0_i32_1 = arith.constant 0 : i32
    return %arg0, %c0_i32, %c0_i32_0 : i32, i32, i32
  }
  func.func @transform_1(%arg0: i32) -> (i32, i32) {
    %c0_i32 = arith.constant 0 : i32
    %c0_i32_0 = arith.constant 0 : i32
    %c0_i32_1 = arith.constant 0 : i32
    return %c0_i32, %c0_i32_0 : i32, i32
  }
  func.func @transform_2(%arg0: i32) -> (i32, i32) {
    %c0_i32 = arith.constant 0 : i32
    %c0_i32_0 = arith.constant 0 : i32
    %c0_i32_1 = arith.constant 0 : i32
    return %c0_i32, %c0_i32_0 : i32, i32
  }
  func.func @transform_3(%arg0: i32) -> (i32, i32, i32) {
    %c0_i32 = arith.constant 0 : i32
    %c0_i32_0 = arith.constant 0 : i32
    %c0_i32_1 = arith.constant 0 : i32
    %c0_i32_2 = arith.constant 0 : i32
    return %c0_i32, %c0_i32_0, %c0_i32_1 : i32, i32, i32
  }
  func.func @transform_4(%arg0: i32) -> (i32, i32, i32) {
    %c0_i32 = arith.constant 0 : i32
    %c0_i32_0 = arith.constant 0 : i32
    %c0_i32_1 = arith.constant 0 : i32
    return %arg0, %c0_i32, %c0_i32_0 : i32, i32, i32
  }
}

</mosaic_0001>

<bundles_post_ra>
// kernel: bert_self_attention.1
= control target key start
LH: loop header
LB: loop body
LE: loop exit
PB: predicated region body
PF: predicated region fallthrough
CT: control target
= control target key end

     0   :  { %9 = vsyncpa [#allocation3], 0  ;;  %s965_s0 = inlined_call_operand.hbm [shape: f32[2,8,9], index: 0, kind: input, shape index: {}]   ;;  %s966_s1 = inlined_call_operand.hbm [shape: f32[9,18], index: 1, kind: input, shape index: {}]   ;;  %s967_s2 = inlined_call_operand.vmem [shape: f32[1,18], index: 2, kind: input, shape index: {}]   ;;  %s968_s3 = inlined_call_operand.hbm [shape: f32[3,1,6], index: 3, kind: input, shape index: {}]   ;;  %s969_s4 = inlined_call_operand.vmem [shape: f32[2,8,6], index: 4, kind: output, shape index: {}]  }
   0x1   :  { %11 = vsyncpa [#allocation3 + $0x1], 0 }
   0x2   :  { %12 = vsyncpa [#allocation5], 0  ;;  %s832_s15 = smov 0   ;;  %s834_s16 = smov 0  }
   0x3   :  { %s836_s17 = smov 0   ;;  %s838_s18 = smov 0  }
   0x4 LB: > { %s149_s21 = sshll.u32 %s966_s1, 4  ;;  %s856_s22 = sadd.s32 4294967295, %s796_s18   ;;  %s796_s18 = sphi %s838_s18, %s976_s18   ;;  %s792_s17 = sphi %s836_s17, %s975_s17   ;;  %s788_s16 = sphi %s834_s16, %s974_s16   ;;  %s784_s15 = sphi %s832_s15, %s973_s15   ;;  %s150_s21 = int_to_ptr.hbm [resolvable:$true] %s149_s21 }
   0x5   : > { %p557_p0 = scmp.ge.s32.totalorder %s796_s18, 1  ;;  %p39_p1 = scmp.eq.s32.totalorder %s856_s22, 0 }
   0x6   : > { %p138_p2 = scmp.lt.s32.totalorder %s796_s18, 3  ;;  %s798_s24 = smov [#allocation4]  }
   0x7   : > { %s151_s25 = sshll.u32 %s798_s24, 4  ;;  %s166_s28 = sshll.u32 %s968_s3, 4  ;;  %s152_s25 = int_to_ptr.vmem [resolvable:$true] %s151_s25  ;;  %s167_s28 = int_to_ptr.hbm [resolvable:$true] %s166_s28 }
   0x8   : > { %p861_p3 = pnand %p557_p0, %p138_p2  ;;  %s799_s29 = smov [#allocation6]  }
   0x9   : > { %s168_s30 = sshll.u32 %s799_s29, 4  ;;  %s800_s5 = smov 128   ;;  %s169_s30 = int_to_ptr.vmem [resolvable:$true] %s168_s30 }
   0xa   : > { %p590_p4 = pneg %p861_p3  ;;  %s801_s6 = smov 8  }
   0xb   : > { %s802_s7 = smov 16   ;;  %s803_s8 = smov 1  }
   0xc   : > { %p591_p5 = pnand %p590_p4, %p39_p1  ;;  %s873_s9 = sadd.s32 1, %s796_s18  }
   0xd   : > { %s22_s10 = ssub.s32 %s796_s18, %s873_s9  ;;  %s25_s11 = sadd.s32 1, %s792_s17 }
   0xe   : > { %593 = dma.hbm_to_vmem [thread:$0]  (!%p591_p5), %s150_s21, 256, %s152_s25, [#allocation5], %s800_s5, %s800_s5, %s801_s6  }
   0xf   : > { %596 = dma.hbm_to_vmem [thread:$0]  (!%p591_p5), %s167_s28, 48, %s169_s30, [#allocation5], %s802_s7, %s802_s7, %s803_s8  }
  0x10   : > { %p23_p6 = scmp.eq.s32.totalorder %s22_s10, 0  ;;  %p32_p7 = scmp.ne.s32.totalorder %s792_s17, %s788_s16 }
  0x11   : > { %p33_p8 = scmp.eq.s32.totalorder %s796_s18, 0  ;;  %p38_p9 = scmp.ne.s32.totalorder %s788_s16, %s784_s15 }
  0x12   : > { %s884_s12 = scalar_select %p23_p6, %s792_s17, %s25_s11  }
  0x13   : > { %p888_p10 = por %p39_p1, %p38_p9  ;;  %p603_p11 = scmp.lt.s32.totalorder %s796_s18, 2 }
  0x14   : > { %s182_s14 = sand.u32 1, %s792_s17   ;;  %s562_s19 = sshll.u32 %s796_s18, 3 }
  0x15   : > { %p34_p12 = por %p33_p8, %p32_p7  ;;  %s561_s20 = sshll.u32 %s182_s14, 3 }
  0x16   : > { %s190_s25 = scalar_lea.hbm %s965_s0, %s562_s19  ;;  %s186_s27 = scalar_lea.vmem [#allocation2], %s561_s20 }
  0x17   : > { %s192_s26 = sshll.u32 %s190_s25, 4  ;;  %s194_s28 = sshll.u32 %s186_s27, 4  ;;  %s193_s26 = int_to_ptr.hbm [resolvable:$true] %s192_s26  ;;  %s195_s28 = int_to_ptr.vmem [resolvable:$true] %s194_s28 }
  0x18   : > { %p898_p13 = pnand %p603_p11, %p34_p12  ;;  %s183_s29 = scalar_lea.sflag [#allocation3], %s182_s14 }
  0x19   : > { %s728_s30 = sshra.s32 %s193_s26, 4  ;;  %s735_s7 = scalar_lea.hbm %s965_s0, 16  ;;  %s729_s30 = int_to_ptr.hbm [resolvable:$true] %s728_s30 }
  0x1a   : > { %s730_s18 = scalar_lea.hbm %s729_s30, 8  ;;  %p732_p2 = pneg %p898_p13 }
  0x1b   : > { %p731_p0 = scmp.ne.s32.totalorder %s729_s30, %s730_s18  ;;  %p736_p6 = scmp.lt.s32.totalorder %s729_s30, %s965_s0 }
  0x1c   : > { %p737_p7 = scmp.lt.s32.totalorder %s735_s7, %s730_s18 }
  0x1d   : > { %p733_p4 = pnand %p732_p2, %p731_p0 }
  0x1e   : > { %p738_p8 = por %p737_p7, %p736_p6 }
  0x1f   : > { %p734_p5 = pneg %p733_p4 }
  0x21   : > { %p739_p9 = pnand %p738_p8, %p734_p5 }
  0x23   : > { %742 = shalt.err (!%p739_p9)
}
  0x24   : > { %600 = dma.hbm_to_vmem [thread:$0]  (!%p898_p13), %s193_s26, 128, %s195_s28, %s183_s29  }
  0x25   : > { %203 = sbr.rel (%p861_p3) target bundleno = 836 (0x344), region = 36  ;;  %s205_s11 = sand.u32 (!%p861_p3), 1, %s788_s16  }
  0x26   : > { %s564_s14 = sshll.u32 (!%p861_p3), %s205_s11, 3  ;;  %s206_s19 = scalar_lea.sflag (!%p861_p3), [#allocation3], %s205_s11 }
  0x27   : > { %s209_s20 = scalar_lea.vmem (!%p861_p3), [#allocation2], %s564_s14 }
  0x2a   : > { %775 = dma.done.wait (%p888_p10), %s206_s19, 128  }
  0x2b   : > { %777 = vsyncadd (%p888_p10), %s206_s19, 4294967168 }
  0x2c   : > { %779 = dma.done.wait (%p39_p1), [#allocation5], 304  }
  0x2d   : > { %781 = vsyncadd (%p39_p1), [#allocation5], 4294966992  ;;  %vm259_vm0 = vcmask 1040384   ;;  %v250_v0 = vld [vmem:[#allocation4 + $0x8] sm:$0x1]  ;;  %v249_v1 = vld [vmem:[#allocation4] sm:$0xff] }
  0x2e   : > { %v248_v2 = vld [vmem:[%s209_s20] sm:$0xff]  ;;  %vm255_vm1 = vcmask 72704   ;;  %568 = vmatpush.msk.msra.mxu0 %vm259_vm0, %v250_v0  ;;  %s804_s23 = smov 12   ;;  %s805_s24 = smov 122   ;;  %vm301_vm2 = vcmask 48128   ;;  %vm339_vm3 = vcmask 64512  }
  0x2f   : > { %v652_v3 = vld [vmem:[#allocation6] ss:$0 sm:$0xff]  ;;  %v653_v4 = vld [vmem:[#allocation6 + $0x1] ss:$0 sm:$0xff]  ;;  %v655_v8 = vld [vmem:[#allocation6 + $0x2] ss:$0 sm:$0xff] }
  0x30   : > { %278 = vmatpush.msra.mxu0 %v249_v1  ;;  %373 = vrot.lane.b32.xlu2 %v652_v3, %s804_s23  ;;  %v654_v5 = vld [vmem:[%s967_s2] ss:$0 sm:$0xff]  ;;  %s806_s25 = smov 116   ;;  %p244_p1 = scmp.lt.s32.totalorder %s856_s22, 1 }
  0x31   : > { %569 = vmatmul.msk.f32.vlgmr.msra.gmra.mxu0 %vm255_vm1, %v248_v2 }
  0x32   : > { %s978_s22 = smov (!%p244_p1, %s856_s22), 1 }
  0x33   : > { %s567_s26 = sshll.u32 %s978_s22, 3 }
  0x34   : > { %s247_s15 = scalar_lea.vmem %s969_s4, %s567_s26 }
  0x38   : > { %375 = vrot.lane.b32.xlu2 %v653_v4, %s804_s23 }
  0x8a   : > { %v374_v33 = vpop.permute.xlu2 %373 }
  0x92   : > { %v376_v36 = vpop.permute.xlu2 %375 }
  0xae   : > { %v280_v6 = vpop.f32.mrf.mxu0 }
  0xaf   : > { %v281_v7 = vadd.f32 %v654_v5, %v280_v6 }
  0xb1   : > { %299 = vrot.lane.b32.xlu0 %v281_v7, %s805_s24  ;;  %v295_v10 = vmul.f32 %v652_v3, %v281_v7  ;;  %v297_v11 = vmul.f32 %v655_v8, %v281_v7  ;;  %v296_v12 = vmul.f32 %v653_v4, %v281_v7  ;;  %v382_v35 = vmul.f32 %v374_v33, %v281_v7 }
  0xb2   : > { %v383_v38 = vmul.f32 %v376_v36, %v281_v7 }
 0x123   : > { %v300_v9 = vpop.permute.xlu0 %299 }
 0x124   : > { %570 = vmatpush.xpose.msk.msra.mxu1 %vm301_vm2, %v300_v9  ;;  %579 = vmatpush.xpose.msk.msra.mxu3 %vm301_vm2, %v300_v9 }
 0x127   : > { %571 = vmatmul.msk.f32.vlgmr.msra.gmra.mxu1 %vm301_vm2, %v295_v10  ;;  %573 = vmatmul.msk.f32.vlgmr.msra.gmra.mxu3 %vm301_vm2, %v297_v11 }
 0x12f   : > { %572 = vmatmul.msk.f32.gmra.mxu1 %vm301_vm2, %v296_v12 }
 0x1a4   : > { %v330_v13 = vpop.f32.mrf.mxu1 }
 0x1a5   : > { %v340_v14 = vsel %vm339_vm3, %v330_v13, -inf }
 0x1a6   : > { %341 = vmax.xlane.f32.xlu0 %v340_v14 }
 0x1aa   : > { %v336_v15 = vpop.f32.mrf.mxu3 }
 0x1ab   : > { %v346_v16 = vsel %vm339_vm3, %v336_v15, -inf }
 0x1ac   : > { %347 = vmax.xlane.f32.xlu1 %v346_v16  ;;  %v333_v17 = vpop.f32.mrf.mxu1 }
 0x1ad   : > { %v343_v18 = vsel %vm339_vm3, %v333_v17, -inf }
 0x1b4   : > { %344 = vmax.xlane.f32.xlu1 %v343_v18 }
 0x1cd   : > { %377 = vrot.lane.b32.xlu1 %v655_v8, %s804_s23 }
 0x219   : > { %v342_v19 = vpop.xlane.xlu0 %341 }
 0x21a   : > { %v349_v20 = vsub.f32 %v330_v13, %v342_v19 }
 0x21c   : > { %v352_v21 = vmul.f32 1.442695, %v349_v20 }
 0x21e   : > { %656 = vpow2.f32 %v352_v21 }
 0x21f   : > { %v348_v22 = vpop.xlane.xlu1 %347 }
 0x220   : > { %v351_v23 = vsub.f32 %v336_v15, %v348_v22 }
 0x222   : > { %v356_v24 = vmul.f32 1.442695, %v351_v23 }
 0x224   : > { %v657_v25 = vpop.eup %656  ;;  %658 = vpow2.f32 %v356_v24 }
 0x225   : > { %v358_v26 = vsel %vm339_vm3, %v657_v25, 0.0 }
 0x226   : > { %359 = vadd.xlane.f32.xlu2 %v358_v26 }
 0x227   : > { %v345_v27 = vpop.xlane.xlu1 %344 }
 0x228   : > { %v350_v28 = vsub.f32 %v333_v17, %v345_v27 }
 0x22a   : > { %v659_v29 = vpop.eup %658  ;;  %v354_v30 = vmul.f32 1.442695, %v350_v28 }
 0x22b   : > { %v364_v31 = vsel %vm339_vm3, %v659_v29, 0.0 }
 0x22c   : > { %660 = vpow2.f32 %v354_v30  ;;  %365 = vadd.xlane.f32.xlu0 %v364_v31 }
 0x232   : > { %v661_v32 = vpop.eup %660 }
 0x233   : > { %v361_v34 = vsel %vm339_vm3, %v661_v32, 0.0 }
 0x234   : > { %362 = vadd.xlane.f32.xlu1 %v361_v34 }
 0x23e   : > { %386 = vrot.lane.b32.xlu2 %v382_v35, %s806_s25 }
 0x23f   : > { %v378_v37 = vpop.permute.xlu1 %377 }
 0x240   : > { %v384_v39 = vmul.f32 %v378_v37, %v281_v7 }
 0x242   : > { %v647_v40 = vpack.i.bf16 %v384_v39, %v383_v38 }
 0x244   : > { %648 = vrot.lane.b32.xlu0 %v647_v40, %s806_s25 }
 0x299   : > { %v360_v41 = vpop.xlane.xlu2 %359 }
 0x29a   : > { %662 = vrcp.f32 %v360_v41 }
 0x29f   : > { %v366_v45 = vpop.xlane.xlu0 %365 }
 0x2a0   : > { %v663_v42 = vpop.eup %662  ;;  %664 = vrcp.f32 %v366_v45 }
 0x2a1   : > { %v387_v43 = vpop.permute.xlu2 %386  ;;  %v370_v44 = vmul.f32 %v663_v42, %v657_v25 }
 0x2a2   : > { %407 = vmatpush.msra.mxu2 %v387_v43 }
 0x2a3   : > { %574 = vmatmul.msk.f32.vlgmr.msra.gmra.mxu2 %vm339_vm3, %v370_v44 }
 0x2a6   : > { %v665_v47 = vpop.eup %664 }
 0x2a7   : > { %v363_v46 = vpop.xlane.xlu1 %362  ;;  %v372_v53 = vmul.f32 %v665_v47, %v659_v29 }
 0x2a8   : > { %666 = vrcp.f32 %v363_v46 }
 0x2ae   : > { %v667_v48 = vpop.eup %666 }
 0x2af   : > { %v371_v52 = vmul.f32 %v667_v48, %v661_v32 }
 0x2b6   : > { %v649_v49 = vpop.permute.xlu0 %648 }
 0x2b7   : > { %v651_v50 = vunpack.i.h.bf16 %v649_v49  ;;  %v650_v51 = vunpack.i.l.bf16 %v649_v49 }
 0x2b9   : > { %434 = vmatpush.msrb.mxu3 %v650_v51  ;;  %461 = vmatpush.msrb.mxu2 %v651_v50 }
 0x2ba   : > { %575 = vmatmul.msk.f32.vlgmr.msrb.gmra.mxu3 %vm339_vm3, %v371_v52  ;;  %576 = vmatmul.msk.f32.vlgmr.msrb.gmra.mxu2 %vm339_vm3, %v372_v53 }
 0x326   : > { %v409_v54 = vpop.f32.mrf.mxu2 }
 0x327   : > { %v466_v57 = vsel %vm301_vm2, %v409_v54, 0.0 }
 0x33d   : > { %v436_v55 = vpop.f32.mrf.mxu3  ;;  %v463_v56 = vpop.f32.mrf.mxu2 }
 0x33e   : > { %v467_v58 = vsel %vm301_vm2, %v436_v55, 0.0  ;;  %v469_v60 = vsel %vm301_vm2, %v463_v56, 0.0 }
 0x33f   : > { %v468_v59 = vadd.f32 %v467_v58, %v466_v57 }
 0x341   : > { %v470_v61 = vadd.f32 %v469_v60, %v468_v59 }
 0x343   : > { %471 = vst.msk [vmem:[%s247_s15] sm:$0xff] %vm301_vm2, %v470_v61 }
 0x344 PF: > { %p15_p3 = scmp.ge.s32.totalorder %s873_s9, 4   ;;  %s973_s15 = smov %s788_s16 }
 0x345   : > { %s974_s16 = smov %s792_s17  ;;  %s975_s17 = smov %s884_s12 }
 0x346   : > { %s976_s18 = smov %s873_s9  ;;  %17 = sbr.rel (!%p15_p3) target bundleno = 4 (0x4), region = 84 }
 0x34b   :  { %491 = vsyncpa [#allocation3], 1 }
 0x34c   :  { %493 = vsyncpa [#allocation3 + $0x1], 1 }
 0x34d   :  { %494 = vsyncpa [#allocation5], 1 }

</bundles_post_ra>
